<compile_context>
chip_gen: v6e
topology: v6e:2x2x1
jax: 0.10.0
libtpu: 0.0.40
codegen_flags: <defaults>
</compile_context>

<pallas_src>
import functools
import math

import jax
import jax.numpy as jnp
from jax import lax
from jax.experimental import pallas as pl
from jax.experimental.pallas import tpu as pltpu


WEIGHT_DTYPE = jnp.bfloat16   # weight storage dtype in HBM (cast once at init)
MATMUL_DTYPE = jnp.bfloat16   # MXU input dtype for activations
_VMEM_FALLBACK = 32 * 1024 * 1024


def _vmem_limit_bytes():
    # Generation-aware scoped-VMEM limit: ~3/4 of physical VMEM, capped at
    # 100 MiB (v5e/v6e: 128 MiB physical -> ~96 MiB; v7x: 64 MiB -> 48 MiB).
    try:
        cap = getattr(pltpu.get_tpu_info(), "vmem_capacity_bytes", None)
    except Exception:
        cap = None
    if not cap:
        return _VMEM_FALLBACK
    return int(min(cap * 3 // 4, 100 * 1024 * 1024))


def _compiler_params(n_grid_axes):
    return pltpu.CompilerParams(
        dimension_semantics=("parallel",) * n_grid_axes,
        vmem_limit_bytes=_vmem_limit_bytes(),
    )


def _choose_tile(m, cap=512):
    # Largest multiple-of-8 tile (<= cap) dividing m; fall back to m.
    for t in (512, 256, 128, 64, 32, 16, 8):
        if t <= cap and m % t == 0:
            return t
    return m


# ----------------------------------------------------------------------------
# Embedding LayerNorm kernel (token-tiled over flattened B*S)
# ----------------------------------------------------------------------------
def _layernorm_kernel(x_ref, g_ref, b_ref, o_ref, *, eps):
    x = x_ref[...]                                             # (TM, H) f32
    mean = jnp.mean(x, axis=-1, keepdims=True)
    var = jnp.mean((x - mean) ** 2, axis=-1, keepdims=True)    # unbiased=False
    y = (x - mean) * lax.rsqrt(var + eps)
    o_ref[...] = (y * g_ref[...] + b_ref[...]).astype(o_ref.dtype)


def layernorm_tokens(x2, g, b, eps):
    m, h = x2.shape
    tm = _choose_tile(m)
    return pl.pallas_call(
        functools.partial(_layernorm_kernel, eps=eps),
        out_shape=jax.ShapeDtypeStruct((m, h), x2.dtype),
        grid_spec=pltpu.PrefetchScalarGridSpec(
            num_scalar_prefetch=0,
            grid=(m // tm,),
            in_specs=[
                pl.BlockSpec((tm, h), lambda i: (i, 0)),
                pl.BlockSpec((1, h), lambda i: (0, 0)),
                pl.BlockSpec((1, h), lambda i: (0, 0)),
            ],
            out_specs=pl.BlockSpec((tm, h), lambda i: (i, 0)),
        ),
        compiler_params=_compiler_params(1),
    )(x2, g, b)


# ----------------------------------------------------------------------------
# Fused encoder layer kernel: attention + res + LN + MLP + res + LN
# (grid over batch; static loop over query/token tiles inside)
# ----------------------------------------------------------------------------
def _encoder_layer_kernel(x_ref, mask_ref, wqkv_ref, bqkv_ref, wo_ref, bo_ref,
                          ln1_w_ref, ln1_b_ref, w1_ref, b1_ref, w2_ref, b2_ref,
                          ln2_w_ref, ln2_b_ref, o_ref, *,
                          num_heads, head_size, eps, q_tile):
    s_len = x_ref.shape[1]
    dq = num_heads * head_size

    x = x_ref[0]                                               # (S, H) f32
    xb = x.astype(MATMUL_DTYPE)

    # Fused QKV projection: one MXU pass (S, H) @ (H, 3*dq), f32 accumulate.
    # Q is pre-scaled: 1/sqrt(head_size) was folded into wqkv/bqkv at init.
    qkv = jnp.dot(xb, wqkv_ref[...],
                  preferred_element_type=jnp.float32) + bqkv_ref[...]
    q = qkv[:, :dq]
    kh = qkv[:, dq:2 * dq].reshape(s_len, num_heads,
                                   head_size).astype(MATMUL_DTYPE)
    vh = qkv[:, 2 * dq:3 * dq].reshape(s_len, num_heads,
                                       head_size).astype(MATMUL_DTYPE)

    mask = mask_ref[...]                                       # (1, 1, S) f32

    # Hoist all parameter loads / broadcast sources out of the tile loop.
    ln1_w, ln1_b = ln1_w_ref[...], ln1_b_ref[...]
    ln2_w, ln2_b = ln2_w_ref[...], ln2_b_ref[...]
    wo, bo = wo_ref[...], bo_ref[...]
    w1, b1 = w1_ref[...], b1_ref[...]
    w2, b2 = w2_ref[...], b2_ref[...]
    inv_sqrt2 = 1.0 / math.sqrt(2.0)

    # Static loop over token tiles: bounds the live (nh, tq, S) softmax
    # intermediates and the (tq, inter) GELU activation; LN/MLP are per-token
    # so everything after K/V can be done per tile and stored directly.
    for t in range(s_len // q_tile):
        lo, hi = t * q_tile, (t + 1) * q_tile
        x_t = x[lo:hi]                                         # (tq, H) f32
        q_t = q[lo:hi].reshape(q_tile, num_heads,
                               head_size).astype(MATMUL_DTYPE)

        # Head-batched scores (nh, tq, S); mask added once (broadcasts).
        scores = jnp.einsum('qhd,khd->hqk', q_t, kh,
                            preferred_element_type=jnp.float32) + mask
        s_max = jnp.max(scores, axis=-1, keepdims=True)
        e = jnp.exp(scores - s_max)
        denom = jnp.sum(e, axis=-1, keepdims=True)
        p = e * pl.reciprocal(denom, approx=True)              # EUP slot

        ctx = jnp.einsum('hqk,khd->qhd', p.astype(MATMUL_DTYPE), vh,
                         preferred_element_type=jnp.float32)
        ctx = ctx.reshape(q_tile, dq)

        attn = jnp.dot(ctx.astype(MATMUL_DTYPE), wo,
                       preferred_element_type=jnp.float32) + bo

        # Residual + LayerNorm 1 (f32 stats).
        y = attn + x_t
        mean = jnp.mean(y, axis=-1, keepdims=True)
        var = jnp.mean((y - mean) ** 2, axis=-1, keepdims=True)
        y = (y - mean) * lax.rsqrt(var + eps)
        y = y * ln1_w + ln1_b

        # MLP: Linear -> exact(erf) GELU -> Linear.
        h1 = jnp.dot(y.astype(MATMUL_DTYPE), w1,
                     preferred_element_type=jnp.float32) + b1
        h1 = 0.5 * h1 * (1.0 + lax.erf(h1 * inv_sqrt2))
        mo = jnp.dot(h1.astype(MATMUL_DTYPE), w2,
                     preferred_element_type=jnp.float32) + b2

        # Residual + LayerNorm 2.
        z = mo + y
        mean = jnp.mean(z, axis=-1, keepdims=True)
        var = jnp.mean((z - mean) ** 2, axis=-1, keepdims=True)
        z = (z - mean) * lax.rsqrt(var + eps)
        z = z * ln2_w + ln2_b

        o_ref[0, lo:hi, :] = z.astype(o_ref.dtype)


def encoder_layer(x, add_mask, blk, num_heads, head_size, eps):
    b, s, h = x.shape
    dq = num_heads * head_size
    inter = blk['w1_t'].shape[1]
    q_tile = _choose_tile(s, cap=256)
    in_specs = [
        pl.BlockSpec((1, s, h), lambda i: (i, 0, 0)),          # x
        pl.BlockSpec((1, 1, s), lambda i: (i, 0, 0)),          # additive mask
        pl.BlockSpec((h, 3 * dq), lambda i: (0, 0)),           # wqkv_t (bf16)
        pl.BlockSpec((1, 3 * dq), lambda i: (0, 0)),           # bqkv (f32)
        pl.BlockSpec((dq, h), lambda i: (0, 0)),               # wo_t (bf16)
        pl.BlockSpec((1, h), lambda i: (0, 0)),                # bo
        pl.BlockSpec((1, h), lambda i: (0, 0)),                # ln1 weight
        pl.BlockSpec((1, h), lambda i: (0, 0)),                # ln1 bias
        pl.BlockSpec((h, inter), lambda i: (0, 0)),            # w1_t (bf16)
        pl.BlockSpec((1, inter), lambda i: (0, 0)),            # b1
        pl.BlockSpec((inter, h), lambda i: (0, 0)),            # w2_t (bf16)
        pl.BlockSpec((1, h), lambda i: (0, 0)),                # b2
        pl.BlockSpec((1, h), lambda i: (0, 0)),                # ln2 weight
        pl.BlockSpec((1, h), lambda i: (0, 0)),                # ln2 bias
    ]
    return pl.pallas_call(
        functools.partial(_encoder_layer_kernel, num_heads=num_heads,
                          head_size=head_size, eps=eps, q_tile=q_tile),
        out_shape=jax.ShapeDtypeStruct((b, s, h), x.dtype),
        grid_spec=pltpu.PrefetchScalarGridSpec(
            num_scalar_prefetch=0,
            grid=(b,),
            in_specs=in_specs,
            out_specs=pl.BlockSpec((1, s, h), lambda i: (i, 0, 0)),
        ),
        compiler_params=_compiler_params(1),
    )(x, add_mask,
      blk['wqkv_t'], blk['bqkv'], blk['wo_t'], blk['bo'],
      blk['attn_ln_w'], blk['attn_ln_b'],
      blk['w1_t'], blk['b1'], blk['w2_t'], blk['b2'],
      blk['mlp_ln_w'], blk['mlp_ln_b'])


# ----------------------------------------------------------------------------
# Parameter initialization (deterministic, synthetic)
# Linear weights stored PRE-TRANSPOSED (in_features, out_features) in bf16;
# y = x @ W_t + b  ==  PyTorch  y = x @ W^T + b.  QKV fused into one matrix
# with the attention scale folded into the Q slice.  Biases / LN params f32.
# ----------------------------------------------------------------------------
def _normal(key, shape):
    return jax.random.normal(key, shape, jnp.float32) * 0.02


def init_params(key, cfg):
    hid, inter = cfg['hidden_size'], cfg['intermediate_size']
    dq = cfg['num_heads'] * cfg['head_size']
    n_layers = cfg['num_layers']
    scale = 1.0 / math.sqrt(cfg['head_size'])
    keys = iter(jax.random.split(key, 3 + 6 * n_layers))

    params = {
        'token_embedding': _normal(next(keys), (cfg['vocab_size'], hid)),
        'pos_embedding': _normal(next(keys),
                                 (cfg['max_position_embeddings'], hid)),
        'token_type_embedding': _normal(next(keys),
                                        (cfg['type_vocab_size'], hid)),
        'ln_w': jnp.ones((1, hid), jnp.float32),
        'ln_b': jnp.zeros((1, hid), jnp.float32),
        'blocks': [],
    }
    for _ in range(n_layers):
        wq_t = _normal(next(keys), (hid, dq))
        wk_t = _normal(next(keys), (hid, dq))
        wv_t = _normal(next(keys), (hid, dq))
        bq = jnp.zeros((1, dq), jnp.float32)
        bk = jnp.zeros((1, dq), jnp.float32)
        bv = jnp.zeros((1, dq), jnp.float32)
        blk = {
            # Fused QKV, with the 1/sqrt(head_size) softmax scale folded into Q.
            'wqkv_t': jnp.concatenate([wq_t * scale, wk_t, wv_t],
                                      axis=1).astype(WEIGHT_DTYPE),
            'bqkv': jnp.concatenate([bq * scale, bk, bv], axis=1),
            'wo_t': _normal(next(keys), (dq, hid)).astype(WEIGHT_DTYPE),
            'bo': jnp.zeros((1, hid), jnp.float32),
            'attn_ln_w': jnp.ones((1, hid), jnp.float32),
            'attn_ln_b': jnp.zeros((1, hid), jnp.float32),
            'w1_t': _normal(next(keys), (hid, inter)).astype(WEIGHT_DTYPE),
            'b1': jnp.zeros((1, inter), jnp.float32),
            'w2_t': _normal(next(keys), (inter, hid)).astype(WEIGHT_DTYPE),
            'b2': jnp.zeros((1, hid), jnp.float32),
            'mlp_ln_w': jnp.ones((1, hid), jnp.float32),
            'mlp_ln_b': jnp.zeros((1, hid), jnp.float32),
        }
        params['blocks'].append(blk)
    return params


# ----------------------------------------------------------------------------
# BertCommon forward
# ----------------------------------------------------------------------------
def bert_common_forward(params, cfg, input_ids, token_type_ids=None,
                        one_zero_attention_mask=None):
    batch, seq = input_ids.shape
    hid = cfg['hidden_size']
    eps = cfg['layer_norm_epsilon']

    if token_type_ids is None:
        token_type_ids = jnp.zeros_like(input_ids)
    position = jnp.broadcast_to(jnp.arange(seq), (batch, seq))

    # Additive mask (B, 1, S): 0 for real tokens, -1e4 for padding.
    if one_zero_attention_mask is None:
        add_mask = jnp.zeros((batch, 1, seq), jnp.float32)
    else:
        add_mask = ((1.0 - one_zero_attention_mask.astype(jnp.float32))
                    * -10000.0)[:, None, :]

    # Embedding gathers (plain-JAX glue; no clean Pallas gather for tiny H).
    x = params['token_embedding'][input_ids]
    x = x + params['token_type_embedding'][token_type_ids]
    x = x + params['pos_embedding'][position]

    # Embedding LayerNorm over flattened tokens (dropout = identity, eval mode).
    x2 = layernorm_tokens(x.reshape(batch * seq, hid),
                          params['ln_w'], params['ln_b'], eps)
    x = x2.reshape(batch, seq, hid)

    # One fused pallas_call per encoder layer (attention+LN+MLP+LN).
    for blk in params['blocks']:
        x = encoder_layer(x, add_mask, blk,
                          cfg['num_heads'], cfg['head_size'], eps)
    return x


# ----------------------------------------------------------------------------
# Main
# ----------------------------------------------------------------------------
if __name__ == "__main__":
    cfg = dict(
        vocab_size=128,
        hidden_size=32,
        intermediate_size=64,
        num_layers=2,
        num_heads=4,
        head_size=8,
        max_position_embeddings=64,
        type_vocab_size=2,
        layer_norm_epsilon=1e-12,
    )

    key = jax.random.PRNGKey(0)
    k_params, k_ids = jax.random.split(key)
    params = init_params(k_params, cfg)

    B, S = 2, 8
    input_ids = jax.random.randint(k_ids, (B, S), 0, cfg['vocab_size'],
                                   dtype=jnp.int32)
    token_type_ids = jnp.zeros((B, S), jnp.int32)
    one_zero_mask = jnp.ones((B, S), jnp.int32).at[1, 6:].set(0)

    out = bert_common_forward(params, cfg, input_ids, token_type_ids,
                              one_zero_mask)
    jax.block_until_ready(out)
    assert out.shape == (B, S, cfg['hidden_size'])
    assert bool(jnp.all(jnp.isfinite(out)))
    print("KERNEL_OK")
</pallas_src>

<mosaic_0001>
module attributes {stable_mosaic.version = 11 : i64} {
  func.func @_layernorm_kernel(%arg0: i32, %arg1: memref<16x32xf32, #tpu.memory_space<vmem>>, %arg2: memref<1x32xf32, #tpu.memory_space<vmem>>, %arg3: memref<1x32xf32, #tpu.memory_space<vmem>>, %arg4: memref<16x32xf32, #tpu.memory_space<vmem>>) attributes {dimension_semantics = [#tpu.dimension_semantics<parallel>], iteration_bounds = array<i64: 1>, scalar_prefetch = 0 : i64, scratch_operands = 0 : i64, tpu.core_type = #tpu.core_type<tc>, window_params = [{transform_indices = @transform_0, window_bounds = array<i64: 16, 32>}, {pipeline_mode = #tpu.pipeline_mode<synchronous>, transform_indices = @transform_1, window_bounds = array<i64: 1, 32>}, {pipeline_mode = #tpu.pipeline_mode<synchronous>, transform_indices = @transform_2, window_bounds = array<i64: 1, 32>}, {transform_indices = @transform_3, window_bounds = array<i64: 16, 32>}]} {
    %c0 = arith.constant 0 : index
    %c0_0 = arith.constant 0 : index
    %0 = vector.load %arg1[%c0, %c0_0] : memref<16x32xf32, #tpu.memory_space<vmem>>, vector<16x32xf32>
    %cst = arith.constant dense<0.000000e+00> : vector<16xf32>
    %1 = vector.multi_reduction <add>, %0, %cst [1] : vector<16x32xf32> to vector<16xf32>
    %2 = vector.shape_cast %1 : vector<16xf32> to vector<16x1xf32>
    %cst_1 = arith.constant 3.200000e+01 : f32
    %3 = vector.broadcast %cst_1 : f32 to vector<16x1xf32>
    %4 = arith.divf %2, %3 : vector<16x1xf32>
    %5 = vector.broadcast %4 : vector<16x1xf32> to vector<16x32xf32>
    %6 = arith.subf %0, %5 : vector<16x32xf32>
    %7 = arith.mulf %6, %6 : vector<16x32xf32>
    %cst_2 = arith.constant dense<0.000000e+00> : vector<16xf32>
    %8 = vector.multi_reduction <add>, %7, %cst_2 [1] : vector<16x32xf32> to vector<16xf32>
    %9 = vector.shape_cast %8 : vector<16xf32> to vector<16x1xf32>
    %cst_3 = arith.constant 3.200000e+01 : f32
    %10 = vector.broadcast %cst_3 : f32 to vector<16x1xf32>
    %11 = arith.divf %9, %10 : vector<16x1xf32>
    %12 = vector.broadcast %4 : vector<16x1xf32> to vector<16x32xf32>
    %13 = arith.subf %0, %12 : vector<16x32xf32>
    %cst_4 = arith.constant 9.99999996E-13 : f32
    %14 = vector.broadcast %cst_4 : f32 to vector<16x1xf32>
    %15 = arith.addf %11, %14 : vector<16x1xf32>
    %16 = math.rsqrt %15 : vector<16x1xf32>
    %17 = vector.broadcast %16 : vector<16x1xf32> to vector<16x32xf32>
    %18 = arith.mulf %13, %17 : vector<16x32xf32>
    %c0_5 = arith.constant 0 : index
    %c0_6 = arith.constant 0 : index
    %19 = vector.load %arg2[%c0_5, %c0_6] : memref<1x32xf32, #tpu.memory_space<vmem>>, vector<1x32xf32>
    %20 = vector.broadcast %19 : vector<1x32xf32> to vector<16x32xf32>
    %21 = arith.mulf %18, %20 : vector<16x32xf32>
    %c0_7 = arith.constant 0 : index
    %c0_8 = arith.constant 0 : index
    %22 = vector.load %arg3[%c0_7, %c0_8] : memref<1x32xf32, #tpu.memory_space<vmem>>, vector<1x32xf32>
    %23 = vector.broadcast %22 : vector<1x32xf32> to vector<16x32xf32>
    %24 = arith.addf %21, %23 : vector<16x32xf32>
    %c0_9 = arith.constant 0 : index
    %c0_10 = arith.constant 0 : index
    %25 = vector.load %arg4[%c0_9, %c0_10] : memref<16x32xf32, #tpu.memory_space<vmem>>, vector<16x32xf32>
    tpu.vector_store %arg4[%c0_9, %c0_10], %24 {strides = array<i32>} : memref<16x32xf32, #tpu.memory_space<vmem>>, vector<16x32xf32>,
    return
  }
  func.func @transform_0(%arg0: i32) -> (i32, i32) {
    %c0_i32 = arith.constant 0 : i32
    %c0_i32_0 = arith.constant 0 : i32
    return %arg0, %c0_i32 : i32, i32
  }
  func.func @transform_1(%arg0: i32) -> (i32, i32) {
    %c0_i32 = arith.constant 0 : i32
    %c0_i32_0 = arith.constant 0 : i32
    %c0_i32_1 = arith.constant 0 : i32
    return %c0_i32, %c0_i32_0 : i32, i32
  }
  func.func @transform_2(%arg0: i32) -> (i32, i32) {
    %c0_i32 = arith.constant 0 : i32
    %c0_i32_0 = arith.constant 0 : i32
    %c0_i32_1 = arith.constant 0 : i32
    return %c0_i32, %c0_i32_0 : i32, i32
  }
  func.func @transform_3(%arg0: i32) -> (i32, i32) {
    %c0_i32 = arith.constant 0 : i32
    %c0_i32_0 = arith.constant 0 : i32
    return %arg0, %c0_i32 : i32, i32
  }
}

</mosaic_0001>

<bundles_post_ra>
// kernel: tpu_custom_call.1
= control target key start
LH: loop header
LB: loop body
LE: loop exit
PB: predicated region body
PF: predicated region fallthrough
CT: control target
= control target key end

     0   :  { %8 = vsyncpa [#allocation3], 0  ;;  %s198_s0 = inlined_call_operand.hbm [shape: f32[16,32], index: 0, kind: input, shape index: {}]   ;;  %s199_s1 = inlined_call_operand.vmem [shape: f32[1,32], index: 1, kind: input, shape index: {}]   ;;  %s200_s2 = inlined_call_operand.vmem [shape: f32[1,32], index: 2, kind: input, shape index: {}]   ;;  %s201_s3 = inlined_call_operand.hbm [shape: f32[16,32], index: 3, kind: output, shape index: {}]  }
   0x1   :  { %9 = vsyncpa [#allocation4], 0  ;;  %s150_s12 = smov [#allocation2]  }
   0x2   :  { %s15_s13 = sshll.u32 %s150_s12, 4  ;;  %s16_s13 = int_to_ptr.vmem [resolvable:$true] %s15_s13 }
   0x3   :  { %s114_s14 = scalar_lea.vmem %s16_s13, 256  ;;  %p119_p1 = scmp.lt.s32.totalorder %s16_s13, %s16_s13 }
   0x4   :  { %p115_p0 = scmp.ne.s32.totalorder %s16_s13, %s114_s14  ;;  %p120_p2 = scmp.lt.s32.totalorder %s114_s14, %s114_s14 }
   0x6   :  { %p121_p3 = por %p120_p2, %p119_p1 }
   0x8   :  { %p122_p4 = pnand %p121_p3, %p115_p0 }
   0xa   :  { %125 = shalt.err (!%p122_p4)
}
   0xb   :  { %s151_s15 = smov 128   ;;  %s152_s16 = smov 8  }
   0xc   :  { %21 = dma.hbm_to_vmem [thread:$0]  %s198_s0, 256, %s16_s13, [#allocation3], %s151_s15, %s151_s15, %s152_s16  }
   0xd   :  { %146 = dma.done.wait [#allocation3], 256  }
   0xe   :  { %147 = vsyncadd [#allocation3], 4294967040  ;;  %vm31_vm0 = vcmask 261120   ;;  %v29_v0 = vld [vmem:[#allocation2] sm:$0xff]  ;;  %v30_v1 = vld [vmem:[#allocation2 + $0x8] sm:$0xff]  ;;  %s153_s22 = smov [#allocation5]  }
   0xf   :  { %v32_v2 = vsel %vm31_vm0, %v29_v0, 0.0  ;;  %v35_v3 = vsel %vm31_vm0, %v30_v1, 0.0  ;;  %v96_v21 = vld [vmem:[%s199_s1] ss:$0 sm:$0xff]  ;;  %s84_s23 = sshll.u32 %s153_s22, 4  ;;  %s85_s23 = int_to_ptr.vmem [resolvable:$true] %s84_s23 }
  0x10   :  { %33 = vadd.xlane.f32.xlu0 %v32_v2  ;;  %v97_v23 = vld [vmem:[%s200_s2] ss:$0 sm:$0xff]  ;;  %s126_s24 = scalar_lea.vmem %s85_s23, 256  ;;  %p131_p6 = scmp.lt.s32.totalorder %s85_s23, %s85_s23 }
  0x11   :  { %p127_p5 = scmp.ne.s32.totalorder %s85_s23, %s126_s24  ;;  %p132_p7 = scmp.lt.s32.totalorder %s126_s24, %s126_s24 }
  0x13   :  { %p133_p8 = por %p132_p7, %p131_p6 }
  0x14   :  { %36 = vadd.xlane.f32.xlu0 %v35_v3 }
  0x15   :  { %p134_p9 = pnand %p133_p8, %p127_p5 }
  0x99   :  { %v34_v4 = vpop.xlane.xlu0 %33 }
  0x9a   :  { %v39_v5 = vmul.f32 0.03125, %v34_v4 }
  0x9c   :  { %v41_v6 = vsub.f32 %v29_v0, %v39_v5 }
  0x9d   :  { %v37_v7 = vpop.xlane.xlu0 %36 }
  0x9e   :  { %v40_v8 = vmul.f32 0.03125, %v37_v7  ;;  %v43_v9 = vmul.f32 %v41_v6, %v41_v6 }
  0xa0   :  { %v42_v10 = vsub.f32 %v30_v1, %v40_v8  ;;  %v45_v11 = vsel %vm31_vm0, %v43_v9, 0.0 }
  0xa1   :  { %46 = vadd.xlane.f32.xlu1 %v45_v11 }
  0xa2   :  { %v44_v12 = vmul.f32 %v42_v10, %v42_v10 }
  0xa4   :  { %v48_v13 = vsel %vm31_vm0, %v44_v12, 0.0 }
  0xa5   :  { %49 = vadd.xlane.f32.xlu1 %v48_v13 }
 0x12a   :  { %v47_v14 = vpop.xlane.xlu1 %46 }
 0x12b   :  { %v51_v15 = vmul.f32 0.03125, %v47_v14 }
 0x12d   :  { %v53_v16 = vadd.f32 1e-12, %v51_v15 }
 0x12e   :  { %v50_v17 = vpop.xlane.xlu1 %49 }
 0x12f   :  { %102 = vrsqrt.f32 %v53_v16  ;;  %v52_v18 = vmul.f32 0.03125, %v50_v17 }
 0x131   :  { %v54_v19 = vadd.f32 1e-12, %v52_v18 }
 0x133   :  { %104 = vrsqrt.f32 %v54_v19 }
 0x13c   :  { %v103_v20 = vpop.eup %102 }
 0x13d   :  { %v57_v22 = vmul.f32 %v103_v20, %v41_v6 }
 0x13f   :  { %v66_v24 = vmul.f32 %v96_v21, %v57_v22 }
 0x140   :  { %v105_v25 = vpop.eup %104 }
 0x141   :  { %v58_v26 = vmul.f32 %v105_v25, %v42_v10  ;;  %v75_v27 = vadd.f32 %v97_v23, %v66_v24 }
 0x143   :  { %v67_v28 = vmul.f32 %v96_v21, %v58_v26  ;;  %77 = vst.msk [vmem:[#allocation5] sm:$0xff] %vm31_vm0, %v75_v27 }
 0x145   :  { %v76_v29 = vadd.f32 %v97_v23, %v67_v28 }
 0x147   :  { %78 = vst.msk [vmem:[#allocation5 + $0x8] sm:$0xff] %vm31_vm0, %v76_v29 }
 0x148   :  { %137 = shalt.err (!%p134_p9)
}
 0x149   :  { %90 = dma.vmem_to_hbm [thread:$0]  %s85_s23, 256, %s201_s3, [#allocation4], %s151_s15, %s151_s15, %s152_s16  }
 0x14a   :  { %148 = dma.done.wait [#allocation4], 256  }
 0x14b   :  { %149 = vsyncadd [#allocation4], 4294967040 }
 0x14c   :  { %94 = vsyncpa [#allocation3], 1 }
 0x14d   :  { %95 = vsyncpa [#allocation4], 1 }

</bundles_post_ra>
